<compile_context>
chip_gen: v7x
topology: tpu7x:2x2x1
jax: 0.10.0
libtpu: 0.0.40
codegen_flags: <defaults>
</compile_context>

<pallas_src>
import jax
import jax.numpy as jnp
from jax.experimental import pallas as pl
from jax.experimental.pallas import tpu as pltpu


def _round_up(x, m):
    return (x + m - 1) // m * m


def _cdiv(a, b):
    return -(-a // b)


def _vmem_capacity_bytes():
    """Physical VMEM per TensorCore; conservative 64 MiB (v7x) fallback."""
    try:
        cap = getattr(pltpu.get_tpu_info(), "vmem_capacity_bytes", None)
        if cap:
            return int(cap)
    except Exception:
        pass
    return 64 << 20


def _out_emb_logsoftmax_kernel(x_ref, w_ref, b_ref, o_ref, m_ref, l_ref):
    """One (row-tile i, vocab-tile k) grid step of Linear + online log_softmax.

    x_ref: (tm, H)   MXU dtype (bf16 or f32), resident across the vocab axis
    w_ref: (H, tv)   MXU dtype, streamed per vocab tile
    b_ref: (1, Vp)   f32, VMEM-resident across the whole grid
    o_ref: (tm, Vp)  output slab, VMEM-resident across the vocab axis
    m_ref, l_ref: (tm, 1) f32 scratch -- running max / running sum(exp)
    """
    k = pl.program_id(1)
    nv = pl.num_programs(1)
    tv = w_ref.shape[1]

    @pl.when(k == 0)
    def _():
        m_ref[...] = jnp.full_like(m_ref, -jnp.inf)
        l_ref[...] = jnp.zeros_like(l_ref)

    col = pl.multiple_of(k * tv, tv)

    # MXU matmul with f32 accumulation; bias add + softmax math stay in f32.
    logits = jnp.dot(x_ref[...], w_ref[...],
                     preferred_element_type=jnp.float32) + b_ref[:, pl.ds(col, tv)]

    # Online logsumexp update over vocab tiles (per-tile XLU reductions).
    m_prev = m_ref[...]
    m_new = jnp.maximum(m_prev, jnp.max(logits, axis=-1, keepdims=True))
    alpha = jnp.exp(m_prev - m_new)
    l_ref[...] = alpha * l_ref[...] + jnp.sum(jnp.exp(logits - m_new),
                                              axis=-1, keepdims=True)
    m_ref[...] = m_new

    # Cache this vocab tile's raw logits in the resident output slab.
    o_ref[:, pl.ds(col, tv)] = logits.astype(o_ref.dtype)

    # Last vocab tile: normalize the whole (tm, Vp) slab in place (f32 math),
    # then Pallas writes it back to HBM once when the row block changes.
    @pl.when(k == nv - 1)
    def _():
        lse = m_ref[...] + jnp.log(l_ref[...])
        o_ref[...] = (o_ref[...].astype(jnp.float32) - lse).astype(o_ref.dtype)


def transformer_output(x, w_hv, bias, *, tile_rows=None, tile_vocab=None,
                       mxu_dtype=jnp.bfloat16, out_dtype=jnp.bfloat16):
    """F.log_softmax(x @ W^T + b, dim=-1).

    x:    (B, T, H)
    w_hv: (H, V)  -- nn.Linear weight re-laid-out ONCE at parameter init
                     (avoids a full-weight transpose on every call).
    bias: (V,)
    out_dtype: dtype of the cached logits slab AND the returned log-probs.
      bf16 (default) halves the dominant VMEM consumer and the N*V HBM
      writeback at ~1e-3 relative error; use f32 for exact log-probs.
    """
    B, T, H = x.shape
    Hw, V = w_hv.shape
    assert Hw == H and bias.shape == (V,)

    N = B * T
    itm = jnp.dtype(mxu_dtype).itemsize
    out_itm = jnp.dtype(out_dtype).itemsize
    row_align = 16 if itm == 2 else 8          # bf16 sublane packing
    V128 = _round_up(V, 128)

    cap = _vmem_capacity_bytes()
    budget = int(cap * 0.9)                    # headroom below physical VMEM

    # ---- row tile: large enough to hide the weight stream, never padded past N
    if tile_rows is None:
        # 128-MiB chips (v5e/v6e): the step is weight-DMA-bound -> larger tm.
        # 64-MiB v7x: 256 balances MXU vs 3.2 TB/s HBM and leaves slab room.
        tile_rows = 512 if cap >= (100 << 20) else 256
    tm = _round_up(max(row_align, min(int(tile_rows), N)), row_align)

    # ---- vocab tile: fit double-buffered weight + resident slab into VMEM ----
    if tile_vocab is None:
        tile_vocab = 2048 if cap >= (100 << 20) else 1024
    tv = min(_round_up(int(tile_vocab), 128), V128)

    def vmem_bytes(tm_, tv_):
        vp = _round_up(V, tv_)
        return (2 * tm_ * H * itm            # x tiles (double-buffered over i)
                + 2 * H * tv_ * itm          # weight stream (double-buffered)
                + 2 * vp * 4                 # resident bias
                + 2 * tm_ * vp * out_itm     # resident output slab
                + 2 * tm_ * 128 * 4)         # m/l scratch (lane-padded)

    # Shrink tv first (down to 512), then tm, then tv as a last resort.
    while vmem_bytes(tm, tv) > budget and tv > 512:
        tv = max(512, _round_up(tv // 2, 128))
    while vmem_bytes(tm, tv) > budget and tm > row_align:
        tm = max(row_align, _round_up(tm // 2, row_align))
    while vmem_bytes(tm, tv) > budget and tv > 128:
        tv = max(128, _round_up(tv // 2, 128))

    # Guarantee >= 2 row tiles when it costs no extra padded rows, so the
    # "parallel" row axis can be sharded across both v7x TensorCores.
    Np = _round_up(N, tm)
    if Np == tm and N > row_align:
        half = _round_up(_cdiv(N, 2), row_align)
        if 2 * half <= Np:
            tm = half
            Np = _round_up(N, tm)

    Vp = _round_up(V, tv)

    # ---- layout prep (pad remainder rows / vocab, cast MXU inputs) ----------
    x2 = x.reshape(N, H)
    if Np != N:
        x2 = jnp.pad(x2, ((0, Np - N), (0, 0)))
    x2 = x2.astype(mxu_dtype)

    w_p = w_hv
    b_p = bias.astype(jnp.float32)
    if Vp != V:
        w_p = jnp.pad(w_p, ((0, 0), (0, Vp - V)))
        # very negative bias on padded vocab columns -> exp() contributes 0
        b_p = jnp.pad(b_p, (0, Vp - V), constant_values=-1e30)
    w_p = w_p.astype(mxu_dtype)
    b_p = b_p.reshape(1, Vp)

    grid = (Np // tm, Vp // tv)

    # Explicit VMEM budget, clamped below physical capacity.
    vmem_limit = min(max(int(1.25 * vmem_bytes(tm, tv)) + (2 << 20), 32 << 20),
                     budget)

    out = pl.pallas_call(
        _out_emb_logsoftmax_kernel,
        out_shape=jax.ShapeDtypeStruct((Np, Vp), out_dtype),
        grid_spec=pltpu.PrefetchScalarGridSpec(
            num_scalar_prefetch=0,
            grid=grid,
            in_specs=[
                pl.BlockSpec((tm, H), lambda i, k: (i, 0)),   # activations (resident over k)
                pl.BlockSpec((H, tv), lambda i, k: (0, k)),   # weight stream
                # NOTE(perf): on v5e/v6e with spare VMEM, pipeline_mode=pl.Buffered(3)
                # on the weight spec can hide row-tile-boundary DMA gaps.
                pl.BlockSpec((1, Vp), lambda i, k: (0, 0)),   # resident bias
            ],
            out_specs=pl.BlockSpec((tm, Vp), lambda i, k: (i, 0)),
            scratch_shapes=[
                pltpu.VMEM((tm, 1), jnp.float32),   # running max
                pltpu.VMEM((tm, 1), jnp.float32),   # running sum(exp)
            ],
        ),
        compiler_params=pltpu.CompilerParams(
            dimension_semantics=("parallel", "arbitrary"),
            vmem_limit_bytes=int(vmem_limit),
        ),
    )(x2, w_p, b_p)

    return out[:N, :V].reshape(B, T, V)


if __name__ == "__main__":
    # args.hid_sz = 32, args.vocab_sz = 128; batch=2, seq=8
    B, T, H, V = 2, 8, 32, 128
    key = jax.random.PRNGKey(0)
    kx, kw, kb = jax.random.split(key, 3)

    x = jax.random.normal(kx, (B, T, H), dtype=jnp.float32)
    bound = 1.0 / (H ** 0.5)
    # PyTorch nn.Linear weight layout: (V, H)
    weight = jax.random.uniform(kw, (V, H), minval=-bound, maxval=bound,
                                dtype=jnp.float32)
    bias = jax.random.uniform(kb, (V,), minval=-bound, maxval=bound,
                              dtype=jnp.float32)

    # One-time parameter re-layout (outside the per-call path): (V, H) -> (H, V).
    w_hv = jnp.asarray(weight.T)

    # 1) f32 MXU + f32 slab -- tight check vs the pure-JAX reference.
    out_f32 = transformer_output(x, w_hv, bias,
                                 mxu_dtype=jnp.float32, out_dtype=jnp.float32)
    out_f32 = jax.block_until_ready(out_f32)
    ref_f32 = jax.nn.log_softmax(x @ weight.T + bias, axis=-1)
    assert out_f32.shape == (B, T, V)
    assert jnp.allclose(out_f32, ref_f32, atol=1e-5, rtol=1e-5), "f32 mismatch"

    # 2) default path: bf16 MXU inputs + bf16 logits slab / output
    #    (f32 accumulation + f32 softmax math; ~1e-3 relative error expected).
    out_bf16 = transformer_output(x, w_hv, bias)
    out_bf16 = jax.block_until_ready(out_bf16)
    ref_bf16 = jax.nn.log_softmax(
        jnp.dot(x.reshape(-1, H).astype(jnp.bfloat16),
                w_hv.astype(jnp.bfloat16),
                preferred_element_type=jnp.float32).reshape(B, T, V) + bias,
        axis=-1)
    assert out_bf16.shape == (B, T, V) and out_bf16.dtype == jnp.bfloat16
    assert jnp.allclose(out_bf16.astype(jnp.float32), ref_bf16,
                        atol=5e-2, rtol=5e-2), "bf16 mismatch"

    # 3) multi-vocab-tile + padded-vocab path (exercises the online logsumexp
    #    across 3 vocab tiles and >= 2 row tiles).
    V2 = 320
    w2 = jax.random.uniform(kw, (H, V2), minval=-bound, maxval=bound,
                            dtype=jnp.float32)
    b2 = jax.random.uniform(kb, (V2,), minval=-bound, maxval=bound,
                            dtype=jnp.float32)
    out2 = transformer_output(x, w2, b2, tile_rows=64, tile_vocab=128,
                              mxu_dtype=jnp.float32, out_dtype=jnp.float32)
    out2 = jax.block_until_ready(out2)
    ref2 = jax.nn.log_softmax(x @ w2 + b2, axis=-1)
    assert out2.shape == (B, T, V2)
    assert jnp.allclose(out2, ref2, atol=1e-5, rtol=1e-5), "tiled-vocab mismatch"

    # 4) non-aligned row count (exercises padded rows being sliced off).
    x3 = jax.random.normal(kx, (2, 7, H), dtype=jnp.float32)
    out3 = transformer_output(x3, w_hv, bias,
                              mxu_dtype=jnp.float32, out_dtype=jnp.float32)
    out3 = jax.block_until_ready(out3)
    ref3 = jax.nn.log_softmax(x3 @ weight.T + bias, axis=-1)
    assert out3.shape == (2, 7, V)
    assert jnp.allclose(out3, ref3, atol=1e-5, rtol=1e-5), "padded-rows mismatch"

    print("KERNEL_OK")
</pallas_src>

<mosaic_0001>
module attributes {stable_mosaic.version = 11 : i64} {
  func.func @_out_emb_logsoftmax_kernel(%arg0: i32, %arg1: i32, %arg2: memref<8x32xf32, #tpu.memory_space<vmem>>, %arg3: memref<32x128xf32, #tpu.memory_space<vmem>>, %arg4: memref<1x128xf32, #tpu.memory_space<vmem>>, %arg5: memref<8x128xf32, #tpu.memory_space<vmem>>, %arg6: memref<8x1xf32, #tpu.memory_space<vmem>>, %arg7: memref<8x1xf32, #tpu.memory_space<vmem>>) attributes {dimension_semantics = [#tpu.dimension_semantics<parallel>, #tpu.dimension_semantics<arbitrary>], iteration_bounds = array<i64: 2, 1>, scalar_prefetch = 0 : i64, scratch_operands = 2 : i64, tpu.core_type = #tpu.core_type<tc>, window_params = [{transform_indices = @transform_0, window_bounds = array<i64: 8, 32>}, {transform_indices = @transform_1, window_bounds = array<i64: 32, 128>}, {pipeline_mode = #tpu.pipeline_mode<synchronous>, transform_indices = @transform_2, window_bounds = array<i64: 1, 128>}, {transform_indices = @transform_3, window_bounds = array<i64: 8, 128>}]} {
    %c0_i32 = arith.constant 0 : i32
    %0 = arith.cmpi eq, %arg1, %c0_i32 : i32
    %1 = arith.extui %0 : i1 to i32
    %c0_i32_0 = arith.constant 0 : i32
    %2 = arith.cmpi ne, %1, %c0_i32_0 : i32
    scf.if %2 {
      %cst_18 = arith.constant 0xFF800000 : f32
      %33 = vector.broadcast %cst_18 : f32 to vector<8x1xf32>
      %c0_19 = arith.constant 0 : index
      %c0_20 = arith.constant 0 : index
      %34 = vector.load %arg6[%c0_19, %c0_20] : memref<8x1xf32, #tpu.memory_space<vmem>>, vector<8x1xf32>
      tpu.vector_store %arg6[%c0_19, %c0_20], %33 {strides = array<i32>} : memref<8x1xf32, #tpu.memory_space<vmem>>, vector<8x1xf32>,
      %cst_21 = arith.constant 0.000000e+00 : f32
      %35 = vector.broadcast %cst_21 : f32 to vector<8x1xf32>
      %c0_22 = arith.constant 0 : index
      %c0_23 = arith.constant 0 : index
      %36 = vector.load %arg7[%c0_22, %c0_23] : memref<8x1xf32, #tpu.memory_space<vmem>>, vector<8x1xf32>
      tpu.vector_store %arg7[%c0_22, %c0_23], %35 {strides = array<i32>} : memref<8x1xf32, #tpu.memory_space<vmem>>, vector<8x1xf32>,
    } else {
    }
    %c128_i32 = arith.constant 128 : i32
    %3 = arith.muli %arg1, %c128_i32 : i32
    %4 = tpu.assume_multiple %3, 128 : i32
    %c0 = arith.constant 0 : index
    %c0_1 = arith.constant 0 : index
    %5 = vector.load %arg2[%c0, %c0_1] : memref<8x32xf32, #tpu.memory_space<vmem>>, vector<8x32xf32>
    %c0_2 = arith.constant 0 : index
    %c0_3 = arith.constant 0 : index
    %6 = vector.load %arg3[%c0_2, %c0_3] : memref<32x128xf32, #tpu.memory_space<vmem>>, vector<32x128xf32>
    %cst = arith.constant dense<0.000000e+00> : vector<8x128xf32>
    %7 = tpu.matmul %5, %6, %cst {dimension_numbers = #tpu.dot_dimension_numbers<[1], [0], [0], [1], [0, 0, 1, 1], [], []>} : vector<8x32xf32>, vector<32x128xf32>, vector<8x128xf32> -> vector<8x128xf32>
    %c0_4 = arith.constant 0 : index
    %8 = arith.index_cast %4 : i32 to index
    %9 = vector.load %arg4[%c0_4, %8] : memref<1x128xf32, #tpu.memory_space<vmem>>, vector<1x128xf32>
    %10 = vector.broadcast %9 : vector<1x128xf32> to vector<8x128xf32>
    %11 = arith.addf %7, %10 : vector<8x128xf32>
    %c0_5 = arith.constant 0 : index
    %c0_6 = arith.constant 0 : index
    %12 = vector.load %arg6[%c0_5, %c0_6] : memref<8x1xf32, #tpu.memory_space<vmem>>, vector<8x1xf32>
    %cst_7 = arith.constant dense<0xFF800000> : vector<8xf32>
    %13 = vector.multi_reduction <maximumf>, %11, %cst_7 [1] : vector<8x128xf32> to vector<8xf32>
    %14 = vector.shape_cast %13 : vector<8xf32> to vector<8x1xf32>
    %15 = arith.maximumf %12, %14 : vector<8x1xf32>
    %16 = arith.subf %12, %15 : vector<8x1xf32>
    %17 = math.exp %16 : vector<8x1xf32>
    %c0_8 = arith.constant 0 : index
    %c0_9 = arith.constant 0 : index
    %18 = vector.load %arg7[%c0_8, %c0_9] : memref<8x1xf32, #tpu.memory_space<vmem>>, vector<8x1xf32>
    %19 = arith.mulf %17, %18 : vector<8x1xf32>
    %20 = vector.broadcast %15 : vector<8x1xf32> to vector<8x128xf32>
    %21 = arith.subf %11, %20 : vector<8x128xf32>
    %22 = math.exp %21 : vector<8x128xf32>
    %cst_10 = arith.constant dense<0.000000e+00> : vector<8xf32>
    %23 = vector.multi_reduction <add>, %22, %cst_10 [1] : vector<8x128xf32> to vector<8xf32>
    %24 = vector.shape_cast %23 : vector<8xf32> to vector<8x1xf32>
    %25 = arith.addf %19, %24 : vector<8x1xf32>
    %c0_11 = arith.constant 0 : index
    %c0_12 = arith.constant 0 : index
    %26 = vector.load %arg7[%c0_11, %c0_12] : memref<8x1xf32, #tpu.memory_space<vmem>>, vector<8x1xf32>
    tpu.vector_store %arg7[%c0_11, %c0_12], %25 {strides = array<i32>} : memref<8x1xf32, #tpu.memory_space<vmem>>, vector<8x1xf32>,
    %c0_13 = arith.constant 0 : index
    %c0_14 = arith.constant 0 : index
    %27 = vector.load %arg6[%c0_13, %c0_14] : memref<8x1xf32, #tpu.memory_space<vmem>>, vector<8x1xf32>
    tpu.vector_store %arg6[%c0_13, %c0_14], %15 {strides = array<i32>} : memref<8x1xf32, #tpu.memory_space<vmem>>, vector<8x1xf32>,
    %c0_15 = arith.constant 0 : index
    %28 = arith.index_cast %4 : i32 to index
    %29 = vector.load %arg5[%c0_15, %28] : memref<8x128xf32, #tpu.memory_space<vmem>>, vector<8x128xf32>
    tpu.vector_store %arg5[%c0_15, %28], %11 {strides = array<i32>} : memref<8x128xf32, #tpu.memory_space<vmem>>, vector<8x128xf32>,
    %c0_i32_16 = arith.constant 0 : i32
    %30 = arith.cmpi eq, %arg1, %c0_i32_16 : i32
    %31 = arith.extui %30 : i1 to i32
    %c0_i32_17 = arith.constant 0 : i32
    %32 = arith.cmpi ne, %31, %c0_i32_17 : i32
    scf.if %32 {
      %c0_18 = arith.constant 0 : index
      %c0_19 = arith.constant 0 : index
      %33 = vector.load %arg6[%c0_18, %c0_19] : memref<8x1xf32, #tpu.memory_space<vmem>>, vector<8x1xf32>
      %c0_20 = arith.constant 0 : index
      %c0_21 = arith.constant 0 : index
      %34 = vector.load %arg7[%c0_20, %c0_21] : memref<8x1xf32, #tpu.memory_space<vmem>>, vector<8x1xf32>
      %35 = math.log %34 : vector<8x1xf32>
      %36 = arith.addf %33, %35 : vector<8x1xf32>
      %c0_22 = arith.constant 0 : index
      %c0_23 = arith.constant 0 : index
      %37 = vector.load %arg5[%c0_22, %c0_23] : memref<8x128xf32, #tpu.memory_space<vmem>>, vector<8x128xf32>
      %38 = vector.broadcast %36 : vector<8x1xf32> to vector<8x128xf32>
      %39 = arith.subf %37, %38 : vector<8x128xf32>
      %c0_24 = arith.constant 0 : index
      %c0_25 = arith.constant 0 : index
      %40 = vector.load %arg5[%c0_24, %c0_25] : memref<8x128xf32, #tpu.memory_space<vmem>>, vector<8x128xf32>
      tpu.vector_store %arg5[%c0_24, %c0_25], %39 {strides = array<i32>} : memref<8x128xf32, #tpu.memory_space<vmem>>, vector<8x128xf32>,
    } else {
    }
    return
  }
  func.func @transform_0(%arg0: i32, %arg1: i32) -> (i32, i32) {
    %c0_i32 = arith.constant 0 : i32
    %c0_i32_0 = arith.constant 0 : i32
    return %arg0, %c0_i32 : i32, i32
  }
  func.func @transform_1(%arg0: i32, %arg1: i32) -> (i32, i32) {
    %c0_i32 = arith.constant 0 : i32
    %c0_i32_0 = arith.constant 0 : i32
    return %c0_i32, %arg1 : i32, i32
  }
  func.func @transform_2(%arg0: i32, %arg1: i32) -> (i32, i32) {
    %c0_i32 = arith.constant 0 : i32
    %c0_i32_0 = arith.constant 0 : i32
    %c0_i32_1 = arith.constant 0 : i32
    return %c0_i32, %c0_i32_0 : i32, i32
  }
  func.func @transform_3(%arg0: i32, %arg1: i32) -> (i32, i32) {
    %c0_i32 = arith.constant 0 : i32
    %c0_i32_0 = arith.constant 0 : i32
    return %arg0, %c0_i32 : i32, i32
  }
}

</mosaic_0001>

<bundles_post_ra>
// kernel: tpu_custom_call.1
= control target key start
LH: loop header
LB: loop body
LE: loop exit
PB: predicated region body
PF: predicated region fallthrough
CT: control target
= control target key end

     0   :  { %8 = vsyncpa [#allocation5], 0  ;;  %s992_s0 = inlined_call_operand.hbm [shape: f32[16,32], index: 0, kind: input, shape index: {}]   ;;  %s993_s1 = inlined_call_operand.hbm [shape: f32[32,128], index: 1, kind: input, shape index: {}]   ;;  %s994_s2 = inlined_call_operand.vmem [shape: f32[1,128], index: 2, kind: input, shape index: {}]   ;;  %s995_s3 = inlined_call_operand.hbm [shape: f32[16,128], index: 3, kind: output, shape index: {}]  }
   0x1   :  { %10 = vsyncpa [#allocation5 + $0x1], 0 }
   0x2   :  { %11 = vsyncpa [#allocation8], 0 }
   0x3   :  { %12 = vsyncpa [#allocation6], 0 }
   0x4   :  { %14 = vsyncpa [#allocation6 + $0x1], 0  ;;  %s767_s12 = smov 0   ;;  %s769_s13 = smov 0  }
   0x5   :  { %s771_s14 = smov 0   ;;  %s773_s15 = smov 0  }
   0x6   :  { %s775_s16 = smov 0   ;;  %s777_s17 = smov 0  }
   0x7 LB: > { %s464_s18 = sadd.s32 4294967295, %s735_s17   ;;  %s465_s19 = sadd.s32 4294967294, %s735_s17   ;;  %s735_s17 = sphi %s777_s17, %s20_s17   ;;  %s731_s16 = sphi %s775_s16, %s1019_s16   ;;  %s727_s15 = sphi %s773_s15, %s1018_s15   ;;  %s723_s14 = sphi %s771_s14, %s1017_s14   ;;  %s719_s13 = sphi %s769_s13, %s1016_s13   ;;  %s715_s12 = sphi %s767_s12, %s1015_s12  }
   0x8   : > { %p52_p0 = scmp.ne.s32.totalorder %s719_s13, %s715_s12  ;;  %p801_p1 = scmp.eq.s32.totalorder %s464_s18, 0 }
   0x9   : > { %p805_p2 = scmp.eq.s32.totalorder %s464_s18, 1  ;;  %p129_p3 = scmp.eq.s32.totalorder %s465_s19, 1 }
   0xa   : > { %s1000_s20 = scalar_select %p801_p1, 1, 0 }
   0xb   : > { %s1001_s21 = scalar_select %p805_p2, 1, 0 }
   0xc   : > { %p811_p4 = por %p801_p1, %p52_p0  ;;  %p466_p5 = scmp.ge.s32.totalorder %s735_s17, 1 }
   0xd   : > { %p816_p6 = por %p129_p3, %p52_p0  ;;  %p136_p7 = scmp.lt.s32.totalorder %s735_s17, 3 }
   0xe   : > { %s1002_s22 = scalar_select %p811_p4, 1, 0 }
   0xf   : > { %s1003_s23 = scalar_select %p816_p6, 1, 0 }
  0x10   : > { %p821_p8 = pnand %p466_p5, %p136_p7  ;;  %s737_s25 = smov [#allocation7]  }
  0x11   : > { %s150_s26 = sshll.u32 %s737_s25, 4  ;;  %s32_s28 = sadd.s32 1, %s731_s16  ;;  %s151_s26 = int_to_ptr.vmem [resolvable:$true] %s150_s26 }
  0x12   : > { %s1004_s24 = scalar_select %p821_p8, 1, 0 }
  0x13   : > { %p511_p9 = pneg %p821_p8  ;;  %s591_s4 = scalar_lea.hbm %s993_s1, 512 }
  0x14   : > { %p592_p12 = scmp.ne.s32.totalorder %s993_s1, %s591_s4  ;;  %p598_p5 = scmp.lt.u32.totalorder %s591_s4, %s993_s1 }
  0x15   : > { %p830_p11 = pnand %p511_p9, %p801_p1 }
  0x17   : > { %p593_p13 = pneg %p830_p11 }
  0x19   : > { %p594_p0 = pnand %p593_p13, %p592_p12 }
  0x1b   : > { %p595_p3 = pneg %p594_p0 }
  0x1d   : > { %p600_p7 = pnand %p598_p5, %p595_p3 }
  0x1f   : > { %603 = shalt.err (!%p600_p7)
}
  0x20   : > { %s604_s9 = scalar_lea.vmem %s151_s26, 512  ;;  %p612_p1 = scmp.lt.s32.totalorder %s151_s26, %s151_s26 }
  0x21   : > { %p605_p9 = scmp.ne.s32.totalorder %s151_s26, %s604_s9  ;;  %p613_p4 = scmp.lt.s32.totalorder %s604_s9, %s604_s9 }
  0x23   : > { %p607_p10 = pnand %p605_p9, %p593_p13  ;;  %p614_p8 = por %p613_p4, %p612_p1 }
  0x25   : > { %p608_p6 = pneg %p607_p10 }
  0x27   : > { %p615_p2 = pnand %p614_p8, %p608_p6 }
  0x29   : > { %618 = shalt.err (!%p615_p2)
}
  0x2a   : > { %s738_s10 = smov 128   ;;  %s739_s11 = smov 8  }
  0x2b   : > { %514 = dma.hbm_to_vmem [thread:$0]  (!%p830_p11), %s993_s1, 512, %s151_s26, [#allocation8], %s738_s10, %s738_s10, %s739_s11  }
  0x2c   : > { %p34_p1 = scmp.ge.s32.totalorder %s32_s28, 2  ;;  %s39_s25 = sadd.s32 1, %s723_s14 }
  0x2d   : > { %p46_p2 = scmp.ne.s32.totalorder %s723_s14, %s719_s13  ;;  %p47_p4 = scmp.eq.s32.totalorder %s735_s17, 0 }
  0x2e   : > { %s1021_s28 = smov (%p34_p1, %s32_s28), 0  ;;  %p1007_p8 = scmp.ne.s32.totalorder %s1001_s21, 0 }
  0x2f   : > { %p857_p6 = por %p47_p4, %p46_p2  ;;  %s36_s27 = ssub.s32 %s731_s16, %s1021_s28 }
  0x30   : > { %p863_p10 = por %p1007_p8, %p46_p2  ;;  %p524_p12 = scmp.lt.s32.totalorder %s735_s17, 2 }
  0x31   : > { %p37_p11 = scmp.eq.s32.totalorder %s36_s27, 0  ;;  %s167_s26 = sand.u32 1, %s723_s14  }
  0x32   : > { %s469_s4 = sshll.u32 %s167_s26, 3  ;;  %s470_s6 = sshll.u32 %s731_s16, 7 }
  0x33   : > { %s872_s5 = scalar_select %p37_p11, %s723_s14, %s39_s25  }
  0x34   : > { %s878_s9 = scalar_lea.hbm %s992_s0, %s470_s6  ;;  %s171_s21 = scalar_lea.vmem [#allocation4], %s469_s4 }
  0x35   : > { %s178_s10 = sshll.u32 %s171_s21, 4  ;;  %p884_p13 = pnand %p524_p12, %p857_p6  ;;  %s880_s10 = int_to_ptr.vmem [resolvable:$true] %s178_s10 }
  0x36   : > { %s168_s18 = scalar_lea.sflag [#allocation5], %s167_s26  ;;  %s619_s19 = scalar_lea.hbm %s878_s9, 128 }
  0x37   : > { %p620_p0 = scmp.ne.s32.totalorder %s878_s9, %s619_s19  ;;  %p621_p3 = pneg %p884_p13 }
  0x38   : > { %s624_s4 = scalar_lea.hbm %s992_s0, 256  ;;  %p625_p9 = scmp.lt.u32.totalorder %s878_s9, %s992_s0 }
  0x39   : > { %p622_p5 = pnand %p621_p3, %p620_p0  ;;  %p626_p1 = scmp.lt.u32.totalorder %s624_s4, %s619_s19 }
  0x3a   : > { %p628_p4 = scmp.lt.u32.totalorder %s619_s19, %s878_s9 }
  0x3b   : > { %p623_p7 = pneg %p622_p5  ;;  %p627_p2 = por %p626_p1, %p625_p9 }
  0x3d   : > { %p629_p6 = por %p628_p4, %p627_p2 }
  0x3f   : > { %p630_p8 = pnand %p629_p6, %p623_p7 }
  0x41   : > { %633 = shalt.err (!%p630_p8)
}
  0x42   : > { %s634_s26 = scalar_lea.vmem %s880_s10, 128  ;;  %s740_s7 = smov [#allocation4]  }
  0x43   : > { %p635_p12 = scmp.ne.s32.totalorder %s880_s10, %s634_s26  ;;  %s639_s8 = sshll.u32 %s740_s7, 4  ;;  %s640_s8 = int_to_ptr.vmem [resolvable:$false] %s639_s8 }
  0x44   : > { %s641_s21 = scalar_lea.vmem %s640_s8, 256  ;;  %p642_p5 = scmp.lt.s32.totalorder %s880_s10, %s640_s8 }
  0x45   : > { %p637_p11 = pnand %p635_p12, %p621_p3  ;;  %p643_p9 = scmp.lt.s32.totalorder %s641_s21, %s634_s26 }
  0x47   : > { %p638_p0 = pneg %p637_p11  ;;  %p644_p1 = por %p643_p9, %p642_p5 }
  0x49   : > { %p645_p2 = pnand %p644_p1, %p638_p0 }
  0x4b   : > { %648 = shalt.err (!%p645_p2)
}
  0x4c   : > { %518 = dma.hbm_to_vmem [thread:$0]  (!%p884_p13), %s878_s9, 128, %s880_s10, %s168_s18  }
  0x4d   : > { %p1010_p7 = scmp.ne.s32.totalorder %s1004_s24, 0 }
  0x4e   : > { %s916_s19 = sand.u32 (!%p1010_p7), 1, %s719_s13   ;;  %p1011_p3 = scmp.ne.s32.totalorder (!%p1010_p7), %s1002_s22, 0 }
  0x4f   : > { %187 = sbr.rel (%p1010_p7) target bundleno = 913 (0x391), region = 32  ;;  %s472_s25 = sshll.u32 (!%p1010_p7), %s916_s19, 3 }
  0x50   : > { %s190_s27 = scalar_lea.sflag (!%p1010_p7), [#allocation5], %s916_s19  ;;  %s193_s4 = scalar_lea.vmem (!%p1010_p7), [#allocation4], %s472_s25 }
  0x56   : > { %702 = dma.done.wait (%p1011_p3), %s190_s27, 128  }
  0x57   : > { %704 = vsyncadd (%p1011_p3), %s190_s27, 4294967168  ;;  %p1012_p13 = scmp.ne.s32.totalorder %s1000_s20, 0 }
  0x59   : > { %706 = dma.done.wait (%p1012_p13), [#allocation8], 512  }
  0x5a   : > { %708 = vsyncadd (%p1012_p13), [#allocation8], 4294966784  ;;  %vm224_vm0 = vcmask 7168   ;;  %v741_v0 = vmov 0.0|0.0   ;;  %v742_v1 = vmov -inf   ;;  %v743_v2 = vmov 0.0  }
  0x5b   : > { %497 = vmatprep.subr.bf16.mxu0 %v741_v0  ;;  %225 = vst.msk [vmem:[#allocation2] sm:$0xff] %vm224_vm0, %v742_v1  ;;  %226 = vst.msk [vmem:[#allocation3] sm:$0xff] %vm224_vm0, %v743_v2  ;;  %vm744_vm1 = vmmov 0   ;;  %v229_v3 = vld [vmem:[#allocation7] sm:$0xff]  ;;  %v230_v4 = vld [vmem:[#allocation7 + $0x8] sm:$0xff]  ;;  %vm243_vm2 = vcmask 261120  }
  0x5c   : > { %494 = vmatprep.mubr.msk.f32.mxu0 %vm744_vm1, %v743_v2  ;;  %v231_v5 = vld [vmem:[#allocation7 + $0x10] sm:$0xff]  ;;  %v498_v6 = vpack.c.bf16 %v230_v4, %v229_v3  ;;  %v232_v7 = vld [vmem:[#allocation7 + $0x18] sm:$0xff]  ;;  %v475_v10 = vld [vmem:[%s994_s2] ss:$0 sm:$0xff]  ;;  %v745_v14 = vmov 0   ;;  %s478_s24 = sshll.u32 %s727_s15, 7 }
  0x5d   : > { %v501_v8 = vpack.c.bf16 %v232_v7, %v231_v5  ;;  %v228_v9 = vld [vmem:[%s193_s4] sm:$0xff]  ;;  %583 = vset.pattern.permute.xlu0 %v745_v14  ;;  %584 = vset.pattern.permute.xlu1 %v745_v14  ;;  %s219_s9 = scalar_lea.vmem [#allocation9], %s472_s25  ;;  %s943_s29 = scalar_lea.hbm %s995_s3, %s478_s24 }
  0x5e   : > { %499 = vmatpush3.bf16.msra.mxu0 %v498_v6  ;;  %s372_s10 = sshll.u32 %s219_s9, 4  ;;  %s359_s6 = scalar_lea.sflag [#allocation6], %s916_s19  ;;  %s945_s10 = int_to_ptr.vmem [resolvable:$true] %s372_s10 }
  0x5f   : > { %500 = vmatprep.subr.bf16.mxu0 %v741_v0  ;;  %s649_s26 = scalar_lea.vmem %s945_s10, 128  ;;  %s746_s15 = smov [#allocation9]  }
  0x60   : > { %p650_p4 = scmp.ne.s32.totalorder %s945_s10, %s649_s26  ;;  %s653_s7 = sshll.u32 %s746_s15, 4  ;;  %s654_s7 = int_to_ptr.vmem [resolvable:$false] %s653_s7 }
  0x61   : > { %s655_s8 = scalar_lea.vmem %s654_s7, 256  ;;  %p656_p12 = scmp.lt.s32.totalorder %s945_s10, %s654_s7 }
  0x62   : > { %502 = vmatpush3.bf16.msra.mxu0 %v501_v8  ;;  %v317_v15 = vld [vmem:[#allocation2] sm:$0xff]  ;;  %v324_v25 = vld [vmem:[#allocation3] sm:$0xff]  ;;  %p651_p6 = pnand %p650_p4, %p863_p10  ;;  %p657_p11 = scmp.lt.s32.totalorder %s655_s8, %s649_s26 }
  0x64   : > { %p652_p8 = pneg %p651_p6  ;;  %p658_p0 = por %p657_p11, %p656_p12 }
  0x65   : > { %495 = vmatmul.mubr.msk.f32.vlgmr.msra.gmra.mrb[0].mxu0 %vm243_vm2, %v228_v9 }
  0x66   : > { %p659_p5 = pnand %p658_p0, %p652_p8 }
 0x138   : > { %v313_v11 = vpop.f32.mrb[0].mxu0 }
 0x139   : > { %v314_v12 = vadd.f32 %v475_v10, %v313_v11  ;;  %v496_v13 = vpop.f32.mrb[1].mxu0 }
 0x13b   : > { %318 = vmax.xlane.f32.xlu0 %v314_v12 }
 0x1c8   : > { %v319_v16 = vpop.xlane.xlu0 %318 }
 0x1c9   : > { %v320_v17 = vmax.f32 %v317_v15, %v319_v16 }
 0x1cb   : > { %v321_v18 = vsub.f32 %v317_v15, %v320_v17  ;;  %339 = vst.msk [vmem:[#allocation2] sm:$0xff] %vm224_vm0, %v320_v17  ;;  %328 = vperm.xlu0 %583, %v320_v17  }
 0x1cd   : > { %v322_v23 = vmul.f32 1.442695, %v321_v18 }
 0x1d2   : > { %v345_v32 = vld [vmem:[#allocation2] sm:$0xff] }
 0x24a   : > { %v329_v19 = vpop.permute.xlu0 %328 }
 0x24b   : > { %v331_v20 = vsub.f32 %v314_v12, %v329_v19 }
 0x24d   : > { %v332_v21 = vmul.f32 1.442695, %v331_v20 }
 0x24f   : > { %585 = vpow2.f32 %v332_v21 }
 0x250   : > { %587 = vpow2.f32 %v322_v23 }
 0x259   : > { %v586_v22 = vpop.eup %585 }
 0x25a   : > { %334 = vadd.xlane.f32.xlu1 %v586_v22  ;;  %v588_v24 = vpop.eup %587 }
 0x25b   : > { %v325_v26 = vmul.f32 %v588_v24, %v324_v25 }
 0x2e7   : > { %v335_v27 = vpop.xlane.xlu1 %334 }
 0x2e8   : > { %v336_v28 = vadd.f32 %v335_v27, %v325_v26 }
 0x2ea   : > { %338 = vst.msk [vmem:[#allocation3] sm:$0xff] %vm224_vm0, %v336_v28 }
 0x2f1   : > { %v346_v29 = vld [vmem:[#allocation3] sm:$0xff] }
 0x2f2   : > { %589 = vlog2.f32 %v346_v29 }
 0x2fc   : > { %v590_v30 = vpop.eup %589 }
 0x2fd   : > { %v348_v31 = vmul.f32 0.6931472, %v590_v30 }
 0x2ff   : > { %v349_v33 = vadd.f32 %v348_v31, %v345_v32 }
 0x301   : > { %353 = vperm.xlu1 %584, %v349_v33  }
 0x380   : > { %v354_v34 = vpop.permute.xlu1 %353 }
 0x381   : > { %v356_v35 = vsub.f32 %v314_v12, %v354_v34 }
 0x383   : > { %357 = vst [vmem:[%s219_s9] sm:$0xff] %v356_v35 }
 0x384   : > { %662 = shalt.err (!%p659_p5)
}
 0x385   : > { %s663_s21 = scalar_lea.hbm %s943_s29, 128  ;;  %s667_s27 = scalar_lea.hbm %s995_s3, 256 }
 0x386   : > { %p664_p9 = scmp.ne.s32.totalorder %s943_s29, %s663_s21  ;;  %p668_p7 = scmp.lt.u32.totalorder %s943_s29, %s995_s3 }
 0x387   : > { %p669_p3 = scmp.lt.u32.totalorder %s667_s27, %s663_s21  ;;  %p671_p4 = scmp.lt.u32.totalorder %s663_s21, %s943_s29 }
 0x388   : > { %p665_p1 = pnand %p664_p9, %p863_p10 }
 0x389   : > { %p670_p13 = por %p669_p3, %p668_p7 }
 0x38a   : > { %p666_p2 = pneg %p665_p1 }
 0x38b   : > { %p672_p6 = por %p671_p4, %p670_p13 }
 0x38d   : > { %p673_p8 = pnand %p672_p6, %p666_p2 }
 0x38f   : > { %676 = shalt.err (!%p673_p8)
}
 0x390   : > { %509 = dma.vmem_to_hbm [thread:$0]  (%p863_p10), %s945_s10, 128, %s943_s29, %s359_s6  }
 0x391 PF: > { %s384_s22 = sand.u32 1, %s715_s12   ;;  %p1013_p12 = scmp.ne.s32.totalorder %s1003_s23, 0 }
 0x392   : > { %p1014_p11 = scmp.ge.s32.totalorder %s735_s17, 2  ;;  %s385_s24 = scalar_lea.sflag [#allocation6], %s384_s22 }
 0x394   : > { %p520_p0 = pnand %p1014_p11, %p1013_p12 }
 0x396   : > { %710 = dma.done.wait (!%p520_p0), %s385_s24, 128  }
 0x397   : > { %712 = vsyncadd (!%p520_p0), %s385_s24, 4294967168  ;;  %s20_s17 = sadd.s32 1, %s735_s17   ;;  %s1015_s12 = smov %s719_s13 }
 0x398   : > { %p17_p5 = scmp.ge.s32.totalorder %s20_s17, 4   ;;  %s1016_s13 = smov %s723_s14 }
 0x399   : > { %s1017_s14 = smov %s872_s5  ;;  %s1018_s15 = smov %s731_s16 }
 0x39a   : > { %s1019_s16 = smov %s1021_s28  ;;  %19 = sbr.rel (!%p17_p5) target bundleno = 7 (0x7), region = 92 }
 0x3a1   :  { %390 = vsyncpa [#allocation5], 1 }
 0x3a2   :  { %392 = vsyncpa [#allocation5 + $0x1], 1 }
 0x3a3   :  { %393 = vsyncpa [#allocation8], 1 }
 0x3a4   :  { %394 = vsyncpa [#allocation6], 1 }
 0x3a5   :  { %396 = vsyncpa [#allocation6 + $0x1], 1 }

</bundles_post_ra>
